<compile_context>
chip_gen: v6e
topology: v6e:2x2x1
jax: 0.10.0
libtpu: 0.0.40
codegen_flags: <defaults>
</compile_context>

<pallas_src>
import jax
import jax.numpy as jnp
from jax import lax
from jax.experimental import pallas as pl
from jax.experimental.pallas import tpu as pltpu


_TARGET_TILE_BYTES = 8 * 1024 * 1024   # per-buffer x tile; amortizes ~0.35us/grid-step


def _nt_dot(w, x):
    # (1, Di) x (TB, Di) -> (1, TB), contracting Di on both operands (NT matmul).
    # Produces a lane-dense (1, TB) result -> unmasked, lane-dense output store.
    return lax.dot_general(
        w, x,
        dimension_numbers=(((1,), (1,)), ((), ())),
        preferred_element_type=jnp.float32,
    )


def _make_segmented_kernel(n_seg):
    """y[b] = sum_s <w_s, x_s[b, :]> + bias, over n_seg feature segments."""
    def kernel(*refs):
        x_refs = refs[:n_seg]              # each (TB, Di) VMEM
        w_refs = refs[n_seg:2 * n_seg]     # each (1, Di)  VMEM (resident)
        b_ref = refs[2 * n_seg]            # (1,) SMEM scalar
        o_ref = refs[2 * n_seg + 1]        # (1, TB) VMEM lane-dense output
        acc = _nt_dot(w_refs[0][...], x_refs[0][...])
        for s in range(1, n_seg):
            acc = acc + _nt_dot(w_refs[s][...], x_refs[s][...])
        o_ref[...] = (acc + b_ref[0]).astype(o_ref.dtype)
    return kernel


def _make_ktiled_kernel(d_total, tk):
    """Feature-tiled variant for very large D: x block (TB, TK), K grid axis last."""
    rem = d_total % tk

    def kernel(x_ref, w_ref, b_ref, o_ref, acc_ref):
        k = pl.program_id(1)

        @pl.when(k == 0)
        def _():
            acc_ref[...] = jnp.zeros_like(acc_ref)

        x = x_ref[...]
        w = w_ref[...]
        if rem != 0:
            # Ragged final K block: lanes >= rem hold stale VMEM data; zero both
            # operands so stale lanes cannot pollute valid output lanes.
            valid = jnp.where(k == pl.num_programs(1) - 1, rem, tk)
            x = jnp.where(lax.broadcasted_iota(jnp.int32, x.shape, 1) < valid, x, 0.0)
            w = jnp.where(lax.broadcasted_iota(jnp.int32, w.shape, 1) < valid, w, 0.0)

        acc_ref[...] += _nt_dot(w, x)

        @pl.when(k == pl.num_programs(1) - 1)
        def _():
            o_ref[...] = (acc_ref[...] + b_ref[0]).astype(o_ref.dtype)

    return kernel


def _vmem_limit_bytes():
    # Generation-aware: ~3/4 of physical VMEM (v5e/v6e: 128 MiB -> 96 MiB;
    # v7x: 64 MiB -> 48 MiB).  Conservative fallback = smallest generation.
    cap = 64 * 1024 * 1024
    try:
        info_cap = int(pltpu.get_tpu_info().vmem_capacity_bytes)
        if info_cap >= 32 * 1024 * 1024:
            cap = info_cap
    except Exception:
        pass
    return (cap * 3) // 4


def _pick_batch_tile(batch, d_total, itemsize, x_budget_bytes):
    """Largest batch tile (multiple of 128) whose double-buffered x tile fits the
    budget, capped at ~_TARGET_TILE_BYTES per buffer.  Returns 0 if even 128 rows
    do not fit (caller switches to the feature-tiled path)."""
    bytes_per_row = d_total * itemsize
    tb_budget = (x_budget_bytes // (2 * bytes_per_row)) // 128 * 128
    if tb_budget < 128:
        return 0
    tb_target = max(128, (_TARGET_TILE_BYTES // bytes_per_row) // 128 * 128)
    return min(tb_budget, tb_target, pl.cdiv(batch, 128) * 128)


def _batch_semantics_options(n_batch_tiles):
    opts = []
    core_parallel = getattr(pltpu, "CORE_PARALLEL", None)
    if core_parallel is not None and n_batch_tiles >= 2:
        # v7x has 2 TensorCores per chip: shard independent batch tiles across them.
        opts.append(core_parallel)
    opts.append("parallel")
    return opts


def _call_with_core_fallback(build, operands, n_batch_tiles):
    err = None
    for sem in _batch_semantics_options(n_batch_tiles):
        try:
            return build(sem)(*operands)
        except Exception as e:   # generation / Mosaic without CORE_PARALLEL support
            err = e
    raise err


def _segmented_linear(xs, ws, bias, *, tb, vmem_limit):
    """Streams each (B, Di) segment in (tb, Di) blocks; no pad, no concat copy."""
    n_seg = len(xs)
    batch = xs[0].shape[0]
    d_total = sum(int(x.shape[1]) for x in xs)
    itemsize = xs[0].dtype.itemsize
    n_tiles = pl.cdiv(batch, tb)

    in_specs = (
        [pl.BlockSpec((tb, int(x.shape[1])), lambda i: (i, 0)) for x in xs]   # streamed
        + [pl.BlockSpec((1, int(w.shape[1])), lambda i: (0, 0)) for w in ws]  # resident
        # TODO(synk): mark the weight specs pipeline_mode=pl.Buffered(1); skipped to stay
        # conservative across jax versions (double-buffering a (1, D) row is negligible).
        + [pl.BlockSpec(memory_space=pltpu.MemorySpace.SMEM)]                 # bias scalar
    )
    cost = pl.CostEstimate(
        flops=2 * batch * d_total,
        transcendentals=0,
        bytes_accessed=batch * d_total * itemsize + d_total * itemsize + batch * itemsize,
    )

    def build(batch_sem):
        return pl.pallas_call(
            _make_segmented_kernel(n_seg),
            out_shape=jax.ShapeDtypeStruct((1, batch), xs[0].dtype),
            grid_spec=pltpu.PrefetchScalarGridSpec(
                num_scalar_prefetch=0,
                grid=(n_tiles,),
                in_specs=in_specs,
                out_specs=pl.BlockSpec((1, tb), lambda i: (0, i)),  # lane-dense output row
            ),
            compiler_params=pltpu.CompilerParams(
                dimension_semantics=(batch_sem,),
                vmem_limit_bytes=int(vmem_limit),
            ),
            cost_estimate=cost,
        )

    y_row = _call_with_core_fallback(build, list(xs) + list(ws) + [bias], n_tiles)
    return y_row.reshape(batch, 1)


def _ktiled_linear(x, weight, bias, *, tb, tk, vmem_limit):
    """Feature-tiled GEMV for very large D: grid (batch tiles, K tiles)."""
    batch, d_total = x.shape
    itemsize = x.dtype.itemsize
    n_b = pl.cdiv(batch, tb)
    n_k = pl.cdiv(d_total, tk)
    cost = pl.CostEstimate(
        flops=2 * batch * d_total,
        transcendentals=0,
        bytes_accessed=batch * d_total * itemsize + d_total * itemsize + batch * itemsize,
    )

    def build(batch_sem):
        return pl.pallas_call(
            _make_ktiled_kernel(d_total, tk),
            out_shape=jax.ShapeDtypeStruct((1, batch), x.dtype),
            grid_spec=pltpu.PrefetchScalarGridSpec(
                num_scalar_prefetch=0,
                grid=(n_b, n_k),
                in_specs=[
                    pl.BlockSpec((tb, tk), lambda i, k: (i, k)),
                    pl.BlockSpec((1, tk), lambda i, k: (0, k)),
                    pl.BlockSpec(memory_space=pltpu.MemorySpace.SMEM),
                ],
                out_specs=pl.BlockSpec((1, tb), lambda i, k: (0, i)),
                scratch_shapes=[pltpu.VMEM((1, tb), jnp.float32)],
            ),
            compiler_params=pltpu.CompilerParams(
                dimension_semantics=(batch_sem, "arbitrary"),
                vmem_limit_bytes=int(vmem_limit),
            ),
            cost_estimate=cost,
        )

    y_row = _call_with_core_fallback(build, [x, weight, bias], n_b)
    return y_row.reshape(batch, 1)


def linear_forward(x, weight, bias):
    """y = x @ weight.T + bias   (PyTorch nn.Linear(input_size, 1) semantics).
    x: (B, D) f32, weight: (1, D) f32, bias: (1,) f32. Returns (B, 1)."""
    batch, d_total = x.shape
    assert weight.shape == (1, d_total) and bias.shape == (1,)
    itemsize = x.dtype.itemsize
    vmem_limit = _vmem_limit_bytes()
    x_budget = (vmem_limit * 3) // 4
    tb = _pick_batch_tile(batch, d_total, itemsize, x_budget)
    if tb > 0:
        return _segmented_linear([x], [weight], bias, tb=tb, vmem_limit=vmem_limit)
    # D too large for a (128, D) double-buffered tile: tile the feature axis too.
    tb_k = 256
    per_buf = min(_TARGET_TILE_BYTES, max(x_budget // 2, 256 * 128 * itemsize))
    tk = max(128, (per_buf // (tb_k * itemsize)) // 128 * 128)
    tk = min(tk, pl.cdiv(d_total, 128) * 128)
    return _ktiled_linear(x, weight, bias, tb=tb_k, tk=tk, vmem_limit=vmem_limit)


def module_forward(gen, signal, clip, seq_shape, weight, bias):
    """Full forward of the PyTorch snippet: flatten each tensor from dim 1,
    concatenate along features, apply nn.Linear(input_size, 1) — with the
    concatenation fused into the kernel (never materialized in HBM)."""
    xs = [t.reshape(t.shape[0], -1) for t in (gen, signal, clip, seq_shape)]
    dims = [int(x.shape[1]) for x in xs]
    d_total = sum(dims)
    batch = xs[0].shape[0]
    assert weight.shape == (1, d_total) and bias.shape == (1,)

    itemsize = xs[0].dtype.itemsize
    vmem_limit = _vmem_limit_bytes()
    x_budget = (vmem_limit * 3) // 4
    tb = _pick_batch_tile(batch, d_total, itemsize, x_budget)
    if tb == 0:
        # TODO(synk): K-tile the segmented path directly; for now fall back to a
        # materialized concat + feature-tiled kernel for very large input_size.
        return linear_forward(jnp.concatenate(xs, axis=1), weight, bias)

    # Split the (1, D) weight row into per-segment (1, Di) slices (tiny arrays).
    ws, off = [], 0
    for d in dims:
        ws.append(lax.slice(weight, (0, off), (1, off + d)))
        off += d
    return _segmented_linear(xs, ws, bias, tb=tb, vmem_limit=vmem_limit)


if __name__ == "__main__":
    key = jax.random.PRNGKey(0)
    k_gen, k_sig, k_clip, k_seq, k_w, k_b = jax.random.split(key, 6)

    # Small shapes consistent with the module: four tensors, flattened from dim 1
    # and concatenated along features -> input_size = 128.
    B = 2
    gen       = jax.random.normal(k_gen,  (B, 4, 8),  dtype=jnp.float32)   # -> (B, 32)
    signal    = jax.random.normal(k_sig,  (B, 2, 16), dtype=jnp.float32)   # -> (B, 32)
    clip      = jax.random.normal(k_clip, (B, 32),    dtype=jnp.float32)   # -> (B, 32)
    seq_shape = jax.random.normal(k_seq,  (B, 8, 4),  dtype=jnp.float32)   # -> (B, 32)

    flat = lambda t: t.reshape(t.shape[0], -1)
    input_size = sum(flat(t).shape[1] for t in (gen, signal, clip, seq_shape))  # 128

    # Deterministic nn.Linear-style init: U(-1/sqrt(fan_in), 1/sqrt(fan_in))
    bound = 1.0 / (float(input_size) ** 0.5)
    weight = jax.random.uniform(k_w, (1, input_size), jnp.float32, -bound, bound)
    bias   = jax.random.uniform(k_b, (1,), jnp.float32, -bound, bound)

    # Fused module forward: flatten + virtual concat + Linear (concat never hits HBM).
    y = jax.block_until_ready(module_forward(gen, signal, clip, seq_shape, weight, bias))

    inputs = jnp.concatenate([flat(gen), flat(signal), flat(clip), flat(seq_shape)], axis=1)
    y_ref = inputs @ weight.T + bias
    assert y.shape == (B, 1)
    assert jnp.allclose(y, y_ref, atol=1e-4, rtol=1e-4)

    # Standalone nn.Linear path on a pre-concatenated input (single-segment kernel).
    y2 = jax.block_until_ready(linear_forward(inputs, weight, bias))
    assert jnp.allclose(y2, y_ref, atol=1e-4, rtol=1e-4)

    # Exercise the feature-tiled (large-D) path on a small ragged case:
    # B=200 (ragged batch tile) and D=400 (ragged K tile with tk=128).
    kx, kw2, kb2 = jax.random.split(jax.random.PRNGKey(1), 3)
    xk = jax.random.normal(kx, (200, 400), dtype=jnp.float32)
    wk = jax.random.normal(kw2, (1, 400), dtype=jnp.float32) * 0.05
    bk = jax.random.normal(kb2, (1,), dtype=jnp.float32)
    yk = jax.block_until_ready(
        _ktiled_linear(xk, wk, bk, tb=256, tk=128, vmem_limit=_vmem_limit_bytes()))
    yk_ref = xk @ wk.T + bk
    assert jnp.allclose(yk, yk_ref, atol=1e-3, rtol=1e-3)

    print("KERNEL_OK")
</pallas_src>

<mosaic_0001>
module attributes {stable_mosaic.version = 11 : i64} {
  func.func @kernel(%arg0: i32, %arg1: memref<128x32xf32, #tpu.memory_space<vmem>>, %arg2: memref<128x32xf32, #tpu.memory_space<vmem>>, %arg3: memref<128x32xf32, #tpu.memory_space<vmem>>, %arg4: memref<128x32xf32, #tpu.memory_space<vmem>>, %arg5: memref<1x32xf32, #tpu.memory_space<vmem>>, %arg6: memref<1x32xf32, #tpu.memory_space<vmem>>, %arg7: memref<1x32xf32, #tpu.memory_space<vmem>>, %arg8: memref<1x32xf32, #tpu.memory_space<vmem>>, %arg9: memref<1xf32, #tpu.memory_space<smem>>, %arg10: memref<1x128xf32, #tpu.memory_space<vmem>>) attributes {dimension_semantics = [#tpu.dimension_semantics<parallel>], iteration_bounds = array<i64: 1>, scalar_prefetch = 0 : i64, scratch_operands = 0 : i64, tpu.core_type = #tpu.core_type<tc>, window_params = [{transform_indices = @transform_0, window_bounds = array<i64: 128, 32>}, {transform_indices = @transform_1, window_bounds = array<i64: 128, 32>}, {transform_indices = @transform_2, window_bounds = array<i64: 128, 32>}, {transform_indices = @transform_3, window_bounds = array<i64: 128, 32>}, {pipeline_mode = #tpu.pipeline_mode<synchronous>, transform_indices = @transform_4, window_bounds = array<i64: 1, 32>}, {pipeline_mode = #tpu.pipeline_mode<synchronous>, transform_indices = @transform_5, window_bounds = array<i64: 1, 32>}, {pipeline_mode = #tpu.pipeline_mode<synchronous>, transform_indices = @transform_6, window_bounds = array<i64: 1, 32>}, {pipeline_mode = #tpu.pipeline_mode<synchronous>, transform_indices = @transform_7, window_bounds = array<i64: 1, 32>}, {transform_indices = @transform_8, window_bounds = array<i64: 1>}, {transform_indices = @transform_9, window_bounds = array<i64: 1, 128>}]} {
    %c0 = arith.constant 0 : index
    %c0_0 = arith.constant 0 : index
    %0 = vector.load %arg5[%c0, %c0_0] : memref<1x32xf32, #tpu.memory_space<vmem>>, vector<1x32xf32>
    %c0_1 = arith.constant 0 : index
    %c0_2 = arith.constant 0 : index
    %1 = vector.load %arg1[%c0_1, %c0_2] : memref<128x32xf32, #tpu.memory_space<vmem>>, vector<128x32xf32>
    %cst = arith.constant dense<0.000000e+00> : vector<1x128xf32>
    %2 = tpu.matmul %0, %1, %cst {dimension_numbers = #tpu.dot_dimension_numbers<[1], [1], [0], [0], [0, 0, 1, 0], [], []>} : vector<1x32xf32>, vector<128x32xf32>, vector<1x128xf32> -> vector<1x128xf32>
    %c0_3 = arith.constant 0 : index
    %c0_4 = arith.constant 0 : index
    %3 = vector.load %arg6[%c0_3, %c0_4] : memref<1x32xf32, #tpu.memory_space<vmem>>, vector<1x32xf32>
    %c0_5 = arith.constant 0 : index
    %c0_6 = arith.constant 0 : index
    %4 = vector.load %arg2[%c0_5, %c0_6] : memref<128x32xf32, #tpu.memory_space<vmem>>, vector<128x32xf32>
    %cst_7 = arith.constant dense<0.000000e+00> : vector<1x128xf32>
    %5 = tpu.matmul %3, %4, %cst_7 {dimension_numbers = #tpu.dot_dimension_numbers<[1], [1], [0], [0], [0, 0, 1, 0], [], []>} : vector<1x32xf32>, vector<128x32xf32>, vector<1x128xf32> -> vector<1x128xf32>
    %6 = arith.addf %2, %5 : vector<1x128xf32>
    %c0_8 = arith.constant 0 : index
    %c0_9 = arith.constant 0 : index
    %7 = vector.load %arg7[%c0_8, %c0_9] : memref<1x32xf32, #tpu.memory_space<vmem>>, vector<1x32xf32>
    %c0_10 = arith.constant 0 : index
    %c0_11 = arith.constant 0 : index
    %8 = vector.load %arg3[%c0_10, %c0_11] : memref<128x32xf32, #tpu.memory_space<vmem>>, vector<128x32xf32>
    %cst_12 = arith.constant dense<0.000000e+00> : vector<1x128xf32>
    %9 = tpu.matmul %7, %8, %cst_12 {dimension_numbers = #tpu.dot_dimension_numbers<[1], [1], [0], [0], [0, 0, 1, 0], [], []>} : vector<1x32xf32>, vector<128x32xf32>, vector<1x128xf32> -> vector<1x128xf32>
    %10 = arith.addf %6, %9 : vector<1x128xf32>
    %c0_13 = arith.constant 0 : index
    %c0_14 = arith.constant 0 : index
    %11 = vector.load %arg8[%c0_13, %c0_14] : memref<1x32xf32, #tpu.memory_space<vmem>>, vector<1x32xf32>
    %c0_15 = arith.constant 0 : index
    %c0_16 = arith.constant 0 : index
    %12 = vector.load %arg4[%c0_15, %c0_16] : memref<128x32xf32, #tpu.memory_space<vmem>>, vector<128x32xf32>
    %cst_17 = arith.constant dense<0.000000e+00> : vector<1x128xf32>
    %13 = tpu.matmul %11, %12, %cst_17 {dimension_numbers = #tpu.dot_dimension_numbers<[1], [1], [0], [0], [0, 0, 1, 0], [], []>} : vector<1x32xf32>, vector<128x32xf32>, vector<1x128xf32> -> vector<1x128xf32>
    %14 = arith.addf %10, %13 : vector<1x128xf32>
    %c0_18 = arith.constant 0 : index
    %15 = memref.load %arg9[%c0_18] : memref<1xf32, #tpu.memory_space<smem>>
    %16 = vector.broadcast %15 : f32 to vector<1x128xf32>
    %17 = arith.addf %14, %16 : vector<1x128xf32>
    %c0_19 = arith.constant 0 : index
    %c0_20 = arith.constant 0 : index
    %18 = vector.load %arg10[%c0_19, %c0_20] : memref<1x128xf32, #tpu.memory_space<vmem>>, vector<1x128xf32>
    tpu.vector_store %arg10[%c0_19, %c0_20], %17 {strides = array<i32>} : memref<1x128xf32, #tpu.memory_space<vmem>>, vector<1x128xf32>,
    return
  }
  func.func @transform_0(%arg0: i32) -> (i32, i32) {
    %c0_i32 = arith.constant 0 : i32
    %c0_i32_0 = arith.constant 0 : i32
    return %arg0, %c0_i32 : i32, i32
  }
  func.func @transform_1(%arg0: i32) -> (i32, i32) {
    %c0_i32 = arith.constant 0 : i32
    %c0_i32_0 = arith.constant 0 : i32
    return %arg0, %c0_i32 : i32, i32
  }
  func.func @transform_2(%arg0: i32) -> (i32, i32) {
    %c0_i32 = arith.constant 0 : i32
    %c0_i32_0 = arith.constant 0 : i32
    return %arg0, %c0_i32 : i32, i32
  }
  func.func @transform_3(%arg0: i32) -> (i32, i32) {
    %c0_i32 = arith.constant 0 : i32
    %c0_i32_0 = arith.constant 0 : i32
    return %arg0, %c0_i32 : i32, i32
  }
  func.func @transform_4(%arg0: i32) -> (i32, i32) {
    %c0_i32 = arith.constant 0 : i32
    %c0_i32_0 = arith.constant 0 : i32
    %c0_i32_1 = arith.constant 0 : i32
    return %c0_i32, %c0_i32_0 : i32, i32
  }
  func.func @transform_5(%arg0: i32) -> (i32, i32) {
    %c0_i32 = arith.constant 0 : i32
    %c0_i32_0 = arith.constant 0 : i32
    %c0_i32_1 = arith.constant 0 : i32
    return %c0_i32, %c0_i32_0 : i32, i32
  }
  func.func @transform_6(%arg0: i32) -> (i32, i32) {
    %c0_i32 = arith.constant 0 : i32
    %c0_i32_0 = arith.constant 0 : i32
    %c0_i32_1 = arith.constant 0 : i32
    return %c0_i32, %c0_i32_0 : i32, i32
  }
  func.func @transform_7(%arg0: i32) -> (i32, i32) {
    %c0_i32 = arith.constant 0 : i32
    %c0_i32_0 = arith.constant 0 : i32
    %c0_i32_1 = arith.constant 0 : i32
    return %c0_i32, %c0_i32_0 : i32, i32
  }
  func.func @transform_8(%arg0: i32) -> i32 {
    %c0_i32 = arith.constant 0 : i32
    %c0_i32_0 = arith.constant 0 : i32
    return %c0_i32 : i32
  }
  func.func @transform_9(%arg0: i32) -> (i32, i32) {
    %c0_i32 = arith.constant 0 : i32
    %c0_i32_0 = arith.constant 0 : i32
    return %c0_i32, %arg0 : i32, i32
  }
}

</mosaic_0001>

<bundles_post_ra>
// kernel: tpu_custom_call.1
= control target key start
LH: loop header
LB: loop body
LE: loop exit
PB: predicated region body
PF: predicated region fallthrough
CT: control target
= control target key end

     0   :  { %15 = vsyncpa [#allocation4], 0  ;;  %s1309_s0 = inlined_call_operand.vmem [shape: f32[2,32], index: 0, kind: input, shape index: {}]   ;;  %s1310_s1 = inlined_call_operand.hbm [shape: f32[2,32], index: 1, kind: input, shape index: {}]   ;;  %s1311_s2 = inlined_call_operand.vmem [shape: f32[2,32], index: 2, kind: input, shape index: {}]   ;;  %s1312_s3 = inlined_call_operand.vmem [shape: f32[2,32], index: 3, kind: input, shape index: {}]   ;;  %s1313_s4 = inlined_call_operand.vmem [shape: f32[1,32], index: 4, kind: input, shape index: {}]   ;;  %s1314_s5 = inlined_call_operand.vmem [shape: f32[1,32], index: 5, kind: input, shape index: {}]   ;;  %s1315_s6 = inlined_call_operand.vmem [shape: f32[1,32], index: 6, kind: input, shape index: {}]   ;;  %s1316_s7 = inlined_call_operand.vmem [shape: f32[1,32], index: 7, kind: input, shape index: {}]   ;;  %s1317_s8 = inlined_call_operand.<no memory space> [shape: f32[1], index: 8, kind: input, shape index: {}]   ;;  %s1318_s9 = inlined_call_operand.hbm [shape: f32[1,2], index: 9, kind: output, shape index: {}]  }
   0x1   :  { %16 = vsyncpa [#allocation5], 0 }
   0x2   :  { %23 = vsyncadd [#allocation4], 2016  ;;  %s948_s30 = smov [#allocation3]  }
   0x3   :  { %s24_s10 = sshll.u32 %s948_s30, 4  ;;  %s25_s10 = int_to_ptr.vmem [resolvable:$true] %s24_s10 }
   0x4   :  { %s912_s11 = scalar_lea.vmem %s25_s10, 32  ;;  %s916_s12 = scalar_lea.vmem %s25_s10, 2048 }
   0x5   :  { %p913_p0 = scmp.ne.s32.totalorder %s25_s10, %s912_s11  ;;  %p917_p1 = scmp.lt.s32.totalorder %s25_s10, %s25_s10 }
   0x6   :  { %p918_p2 = scmp.lt.s32.totalorder %s916_s12, %s912_s11 }
   0x8   :  { %p919_p3 = por %p918_p2, %p917_p1 }
   0xa   :  { %p920_p4 = pnand %p919_p3, %p913_p0 }
   0xc   :  { %923 = shalt.err (!%p920_p4)
}
   0xd   :  { %s949_s13 = smov 32   ;;  %s950_s14 = smov 2  }
   0xe   :  { %30 = dma.hbm_to_vmem [thread:$0]  %s1310_s1, 32, %s25_s10, [#allocation4], %s949_s13, %s949_s13, %s950_s14  }
   0xf   :  { %944 = dma.done.wait [#allocation4], 2048  }
  0x10   :  { %945 = vsyncadd [#allocation4], 4294965248  ;;  %v951_v0 = vmov 0.0   ;;  %vm952_vm0 = vmmov 0   ;;  %vm82_vm1 = vcmask 261120   ;;  %v81_v1 = vld [vmem:[#allocation3 + $0x78] sm:$0xff] }
  0x11   :  { %758 = vmatprep.subr.mxu0 %v951_v0  ;;  %793 = vmatprep.subr.mxu1 %v951_v0  ;;  %v64_v2 = vld [vmem:[%s1309_s0 + $0x78] sm:$0xff]  ;;  %v80_v3 = vld [vmem:[#allocation3 + $0x70] sm:$0xff]  ;;  %v79_v5 = vld [vmem:[#allocation3 + $0x68] sm:$0xff] }
  0x12   :  { %790 = vmatprep.mubr.msk.f32.mxu0 %vm952_vm0, %v951_v0  ;;  %825 = vmatprep.mubr.msk.f32.mxu1 %vm952_vm0, %v951_v0  ;;  %v63_v4 = vld [vmem:[%s1309_s0 + $0x70] sm:$0xff]  ;;  %v62_v6 = vld [vmem:[%s1309_s0 + $0x68] sm:$0xff]  ;;  %v78_v7 = vld [vmem:[#allocation3 + $0x60] sm:$0xff] }
  0x13   :  { %759 = vmatpush3.xpose.msk.msra.mxu0 %vm82_vm1, %v81_v1  ;;  %794 = vmatpush3.xpose.msk.msra.mxu1 %vm82_vm1, %v64_v2  ;;  %v61_v8 = vld [vmem:[%s1309_s0 + $0x60] sm:$0xff]  ;;  %v77_v9 = vld [vmem:[#allocation3 + $0x58] sm:$0xff]  ;;  %v76_v11 = vld [vmem:[#allocation3 + $0x50] sm:$0xff] }
  0x14   :  { %760 = vmatprep.subr.mxu0 %v951_v0  ;;  %795 = vmatprep.subr.mxu1 %v951_v0  ;;  %v60_v10 = vld [vmem:[%s1309_s0 + $0x58] sm:$0xff]  ;;  %v59_v12 = vld [vmem:[%s1309_s0 + $0x50] sm:$0xff]  ;;  %v75_v13 = vld [vmem:[#allocation3 + $0x48] sm:$0xff] }
  0x15   :  { %v58_v14 = vld [vmem:[%s1309_s0 + $0x48] sm:$0xff]  ;;  %v74_v15 = vld [vmem:[#allocation3 + $0x40] sm:$0xff]  ;;  %v73_v17 = vld [vmem:[#allocation3 + $0x38] sm:$0xff] }
  0x16   :  { %v57_v16 = vld [vmem:[%s1309_s0 + $0x40] sm:$0xff]  ;;  %v56_v18 = vld [vmem:[%s1309_s0 + $0x38] sm:$0xff]  ;;  %v72_v19 = vld [vmem:[#allocation3 + $0x30] sm:$0xff] }
  0x17   :  { %761 = vmatpush3.xpose.msk.msra.mxu0 %vm82_vm1, %v80_v3  ;;  %796 = vmatpush3.xpose.msk.msra.mxu1 %vm82_vm1, %v63_v4  ;;  %v55_v20 = vld [vmem:[%s1309_s0 + $0x30] sm:$0xff]  ;;  %v71_v21 = vld [vmem:[#allocation3 + $0x28] sm:$0xff]  ;;  %v70_v23 = vld [vmem:[#allocation3 + $0x20] sm:$0xff] }
  0x18   :  { %762 = vmatprep.subr.mxu0 %v951_v0  ;;  %797 = vmatprep.subr.mxu1 %v951_v0  ;;  %v54_v22 = vld [vmem:[%s1309_s0 + $0x28] sm:$0xff]  ;;  %v53_v24 = vld [vmem:[%s1309_s0 + $0x20] sm:$0xff]  ;;  %v69_v25 = vld [vmem:[#allocation3 + $0x18] sm:$0xff] }
  0x19   :  { %v52_v26 = vld [vmem:[%s1309_s0 + $0x18] sm:$0xff]  ;;  %v68_v27 = vld [vmem:[#allocation3 + $0x10] sm:$0xff]  ;;  %v67_v29 = vld [vmem:[#allocation3 + $0x8] sm:$0xff] }
  0x1a   :  { %v51_v28 = vld [vmem:[%s1309_s0 + $0x10] sm:$0xff]  ;;  %v50_v30 = vld [vmem:[%s1309_s0 + $0x8] sm:$0xff]  ;;  %v66_v31 = vld [vmem:[#allocation3] sm:$0xff] }
  0x1b   :  { %763 = vmatpush3.xpose.msk.msra.mxu0 %vm82_vm1, %v79_v5  ;;  %798 = vmatpush3.xpose.msk.msra.mxu1 %vm82_vm1, %v62_v6  ;;  %v49_v32 = vld [vmem:[%s1309_s0] sm:$0xff]  ;;  %v341_v35 = vld [vmem:[%s1311_s2 + $0x78] sm:$0xff]  ;;  %v340_v37 = vld [vmem:[%s1311_s2 + $0x70] sm:$0xff] }
  0x1c   :  { %764 = vmatprep.subr.mxu0 %v951_v0  ;;  %799 = vmatprep.subr.mxu1 %v951_v0  ;;  %v65_v33 = vld [vmem:[%s1314_s5] sm:$0x1]  ;;  %v480_v36 = vld [vmem:[%s1312_s3 + $0x78] sm:$0xff]  ;;  %v479_v38 = vld [vmem:[%s1312_s3 + $0x70] sm:$0xff] }
  0x1d   :  { %v48_v34 = vld [vmem:[%s1313_s4] sm:$0x1]  ;;  %v339_v39 = vld [vmem:[%s1311_s2 + $0x68] sm:$0xff]  ;;  %v337_v43 = vld [vmem:[%s1311_s2 + $0x58] sm:$0xff] }
  0x1e   :  { %v478_v40 = vld [vmem:[%s1312_s3 + $0x68] sm:$0xff]  ;;  %v338_v41 = vld [vmem:[%s1311_s2 + $0x60] sm:$0xff]  ;;  %v476_v44 = vld [vmem:[%s1312_s3 + $0x58] sm:$0xff] }
  0x1f   :  { %765 = vmatpush3.xpose.msk.msra.mxu0 %vm82_vm1, %v78_v7  ;;  %800 = vmatpush3.xpose.msk.msra.mxu1 %vm82_vm1, %v61_v8  ;;  %v477_v42 = vld [vmem:[%s1312_s3 + $0x60] sm:$0xff]  ;;  %v336_v45 = vld [vmem:[%s1311_s2 + $0x50] sm:$0xff]  ;;  %v335_v47 = vld [vmem:[%s1311_s2 + $0x48] sm:$0xff] }
  0x20   :  { %766 = vmatprep.subr.mxu0 %v951_v0  ;;  %801 = vmatprep.subr.mxu1 %v951_v0  ;;  %v475_v46 = vld [vmem:[%s1312_s3 + $0x50] sm:$0xff]  ;;  %v474_v48 = vld [vmem:[%s1312_s3 + $0x48] sm:$0xff]  ;;  %v334_v49 = vld [vmem:[%s1311_s2 + $0x40] sm:$0xff] }
  0x21   :  { %v473_v50 = vld [vmem:[%s1312_s3 + $0x40] sm:$0xff]  ;;  %v333_v51 = vld [vmem:[%s1311_s2 + $0x38] sm:$0xff]  ;;  %v332_v53 = vld [vmem:[%s1311_s2 + $0x30] sm:$0xff] }
  0x22   :  { %v472_v52 = vld [vmem:[%s1312_s3 + $0x38] sm:$0xff]  ;;  %v471_v54 = vld [vmem:[%s1312_s3 + $0x30] sm:$0xff]  ;;  %v331_v55 = vld [vmem:[%s1311_s2 + $0x28] sm:$0xff] }
  0x23   :  { %767 = vmatpush3.xpose.msk.msra.mxu0 %vm82_vm1, %v77_v9  ;;  %802 = vmatpush3.xpose.msk.msra.mxu1 %vm82_vm1, %v60_v10  ;;  %v470_v56 = vld [vmem:[%s1312_s3 + $0x28] sm:$0xff]  ;;  %v330_v57 = vld [vmem:[%s1311_s2 + $0x20] sm:$0xff]  ;;  %v329_v59 = vld [vmem:[%s1311_s2 + $0x18] sm:$0xff] }
  0x24   :  { %768 = vmatprep.subr.mxu0 %v951_v0  ;;  %803 = vmatprep.subr.mxu1 %v951_v0  ;;  %v469_v58 = vld [vmem:[%s1312_s3 + $0x20] sm:$0xff]  ;;  %v468_v60 = vld [vmem:[%s1312_s3 + $0x18] sm:$0xff]  ;;  %v328_v61 = vld [vmem:[%s1311_s2 + $0x10] sm:$0xff] }
  0x25   :  { %v467_v62 = vld [vmem:[%s1312_s3 + $0x10] sm:$0xff]  ;;  %v327_v63 = vld [vmem:[%s1311_s2 + $0x8] sm:$0xff]  ;;  %v326_v2 = vld [vmem:[%s1311_s2] sm:$0xff] }
  0x26   :  { %v466_v1 = vld [vmem:[%s1312_s3 + $0x8] sm:$0xff]  ;;  %v465_v3 = vld [vmem:[%s1312_s3] sm:$0xff] }
  0x27   :  { %769 = vmatpush3.xpose.msk.msra.mxu0 %vm82_vm1, %v76_v11  ;;  %804 = vmatpush3.xpose.msk.msra.mxu1 %vm82_vm1, %v59_v12  ;;  %v325_v4 = vld [vmem:[%s1315_s6] sm:$0x1]  ;;  %s953_s6 = smov [#allocation6]  }
  0x28   :  { %770 = vmatprep.subr.mxu0 %v951_v0  ;;  %805 = vmatprep.subr.mxu1 %v951_v0 }
  0x2b   :  { %771 = vmatpush3.xpose.msk.msra.mxu0 %vm82_vm1, %v75_v13  ;;  %806 = vmatpush3.xpose.msk.msra.mxu1 %vm82_vm1, %v58_v14  ;;  %v604_v13 = vstv %s1317_s8 }
  0x2c   :  { %772 = vmatprep.subr.mxu0 %v951_v0  ;;  %807 = vmatprep.subr.mxu1 %v951_v0 }
  0x2f   :  { %773 = vmatpush3.xpose.msk.msra.mxu0 %vm82_vm1, %v74_v15  ;;  %808 = vmatpush3.xpose.msk.msra.mxu1 %vm82_vm1, %v57_v16 }
  0x30   :  { %774 = vmatprep.subr.mxu0 %v951_v0  ;;  %809 = vmatprep.subr.mxu1 %v951_v0 }
  0x33   :  { %775 = vmatpush3.xpose.msk.msra.mxu0 %vm82_vm1, %v73_v17  ;;  %810 = vmatpush3.xpose.msk.msra.mxu1 %vm82_vm1, %v56_v18 }
  0x34   :  { %776 = vmatprep.subr.mxu0 %v951_v0  ;;  %811 = vmatprep.subr.mxu1 %v951_v0 }
  0x37   :  { %777 = vmatpush3.xpose.msk.msra.mxu0 %vm82_vm1, %v72_v19  ;;  %812 = vmatpush3.xpose.msk.msra.mxu1 %vm82_vm1, %v55_v20 }
  0x38   :  { %778 = vmatprep.subr.mxu0 %v951_v0  ;;  %813 = vmatprep.subr.mxu1 %v951_v0 }
  0x3b   :  { %779 = vmatpush3.xpose.msk.msra.mxu0 %vm82_vm1, %v71_v21  ;;  %814 = vmatpush3.xpose.msk.msra.mxu1 %vm82_vm1, %v54_v22 }
  0x3c   :  { %780 = vmatprep.subr.mxu0 %v951_v0  ;;  %815 = vmatprep.subr.mxu1 %v951_v0 }
  0x3f   :  { %781 = vmatpush3.xpose.msk.msra.mxu0 %vm82_vm1, %v70_v23  ;;  %816 = vmatpush3.xpose.msk.msra.mxu1 %vm82_vm1, %v53_v24 }
  0x40   :  { %782 = vmatprep.subr.mxu0 %v951_v0  ;;  %817 = vmatprep.subr.mxu1 %v951_v0 }
  0x43   :  { %783 = vmatpush3.xpose.msk.msra.mxu0 %vm82_vm1, %v69_v25  ;;  %818 = vmatpush3.xpose.msk.msra.mxu1 %vm82_vm1, %v52_v26 }
  0x44   :  { %784 = vmatprep.subr.mxu0 %v951_v0  ;;  %819 = vmatprep.subr.mxu1 %v951_v0 }
  0x47   :  { %785 = vmatpush3.xpose.msk.msra.mxu0 %vm82_vm1, %v68_v27  ;;  %820 = vmatpush3.xpose.msk.msra.mxu1 %vm82_vm1, %v51_v28 }
  0x48   :  { %786 = vmatprep.subr.mxu0 %v951_v0  ;;  %821 = vmatprep.subr.mxu1 %v951_v0 }
  0x4b   :  { %787 = vmatpush3.xpose.msk.msra.mxu0 %vm82_vm1, %v67_v29  ;;  %822 = vmatpush3.xpose.msk.msra.mxu1 %vm82_vm1, %v50_v30 }
  0x4c   :  { %788 = vmatprep.subr.mxu0 %v951_v0  ;;  %823 = vmatprep.subr.mxu1 %v951_v0 }
  0x4f   :  { %789 = vmatpush3.xpose.msk.msra.mxu0 %vm82_vm1, %v66_v31  ;;  %824 = vmatpush3.xpose.msk.msra.mxu1 %vm82_vm1, %v49_v32 }
  0x50   :  { %828 = vmatprep.subr.mxu0 %v951_v0  ;;  %863 = vmatprep.subr.mxu1 %v951_v0 }
  0x52   :  { %791 = vmatmul.mubr.msk.f32.vlgmr.msra.gmra.mxu0 %vm82_vm1, %v65_v33  ;;  %826 = vmatmul.mubr.msk.f32.vlgmr.msra.gmra.mxu1 %vm82_vm1, %v48_v34 }
  0x53   :  { %829 = vmatpush3.xpose.msk.msra.mxu0 %vm82_vm1, %v341_v35  ;;  %864 = vmatpush3.xpose.msk.msra.mxu1 %vm82_vm1, %v480_v36 }
  0x54   :  { %830 = vmatprep.subr.mxu0 %v951_v0  ;;  %865 = vmatprep.subr.mxu1 %v951_v0 }
  0x55   :  { %860 = vmatprep.mubr.msk.f32.mxu0 %vm952_vm0, %v951_v0  ;;  %895 = vmatprep.mubr.msk.f32.mxu1 %vm952_vm0, %v951_v0 }
  0x57   :  { %831 = vmatpush3.xpose.msk.msra.mxu0 %vm82_vm1, %v340_v37  ;;  %866 = vmatpush3.xpose.msk.msra.mxu1 %vm82_vm1, %v479_v38 }
  0x58   :  { %832 = vmatprep.subr.mxu0 %v951_v0  ;;  %867 = vmatprep.subr.mxu1 %v951_v0 }
  0x5b   :  { %833 = vmatpush3.xpose.msk.msra.mxu0 %vm82_vm1, %v339_v39  ;;  %868 = vmatpush3.xpose.msk.msra.mxu1 %vm82_vm1, %v478_v40 }
  0x5c   :  { %834 = vmatprep.subr.mxu0 %v951_v0  ;;  %869 = vmatprep.subr.mxu1 %v951_v0 }
  0x5f   :  { %835 = vmatpush3.xpose.msk.msra.mxu0 %vm82_vm1, %v338_v41  ;;  %870 = vmatpush3.xpose.msk.msra.mxu1 %vm82_vm1, %v477_v42 }
  0x60   :  { %836 = vmatprep.subr.mxu0 %v951_v0  ;;  %871 = vmatprep.subr.mxu1 %v951_v0 }
  0x63   :  { %837 = vmatpush3.xpose.msk.msra.mxu0 %vm82_vm1, %v337_v43  ;;  %872 = vmatpush3.xpose.msk.msra.mxu1 %vm82_vm1, %v476_v44 }
  0x64   :  { %838 = vmatprep.subr.mxu0 %v951_v0  ;;  %873 = vmatprep.subr.mxu1 %v951_v0 }
  0x67   :  { %839 = vmatpush3.xpose.msk.msra.mxu0 %vm82_vm1, %v336_v45  ;;  %874 = vmatpush3.xpose.msk.msra.mxu1 %vm82_vm1, %v475_v46 }
  0x68   :  { %840 = vmatprep.subr.mxu0 %v951_v0  ;;  %875 = vmatprep.subr.mxu1 %v951_v0 }
  0x6b   :  { %841 = vmatpush3.xpose.msk.msra.mxu0 %vm82_vm1, %v335_v47  ;;  %876 = vmatpush3.xpose.msk.msra.mxu1 %vm82_vm1, %v474_v48 }
  0x6c   :  { %842 = vmatprep.subr.mxu0 %v951_v0  ;;  %877 = vmatprep.subr.mxu1 %v951_v0 }
  0x6f   :  { %843 = vmatpush3.xpose.msk.msra.mxu0 %vm82_vm1, %v334_v49  ;;  %878 = vmatpush3.xpose.msk.msra.mxu1 %vm82_vm1, %v473_v50 }
  0x70   :  { %844 = vmatprep.subr.mxu0 %v951_v0  ;;  %879 = vmatprep.subr.mxu1 %v951_v0 }
  0x73   :  { %845 = vmatpush3.xpose.msk.msra.mxu0 %vm82_vm1, %v333_v51  ;;  %880 = vmatpush3.xpose.msk.msra.mxu1 %vm82_vm1, %v472_v52 }
  0x74   :  { %846 = vmatprep.subr.mxu0 %v951_v0  ;;  %881 = vmatprep.subr.mxu1 %v951_v0 }
  0x77   :  { %847 = vmatpush3.xpose.msk.msra.mxu0 %vm82_vm1, %v332_v53  ;;  %882 = vmatpush3.xpose.msk.msra.mxu1 %vm82_vm1, %v471_v54 }
  0x78   :  { %848 = vmatprep.subr.mxu0 %v951_v0  ;;  %883 = vmatprep.subr.mxu1 %v951_v0 }
  0x7b   :  { %849 = vmatpush3.xpose.msk.msra.mxu0 %vm82_vm1, %v331_v55  ;;  %884 = vmatpush3.xpose.msk.msra.mxu1 %vm82_vm1, %v470_v56 }
  0x7c   :  { %850 = vmatprep.subr.mxu0 %v951_v0  ;;  %885 = vmatprep.subr.mxu1 %v951_v0 }
  0x7f   :  { %851 = vmatpush3.xpose.msk.msra.mxu0 %vm82_vm1, %v330_v57  ;;  %886 = vmatpush3.xpose.msk.msra.mxu1 %vm82_vm1, %v469_v58 }
  0x80   :  { %852 = vmatprep.subr.mxu0 %v951_v0  ;;  %887 = vmatprep.subr.mxu1 %v951_v0 }
  0x83   :  { %853 = vmatpush3.xpose.msk.msra.mxu0 %vm82_vm1, %v329_v59  ;;  %888 = vmatpush3.xpose.msk.msra.mxu1 %vm82_vm1, %v468_v60 }
  0x84   :  { %854 = vmatprep.subr.mxu0 %v951_v0  ;;  %889 = vmatprep.subr.mxu1 %v951_v0 }
  0x87   :  { %855 = vmatpush3.xpose.msk.msra.mxu0 %vm82_vm1, %v328_v61  ;;  %890 = vmatpush3.xpose.msk.msra.mxu1 %vm82_vm1, %v467_v62 }
  0x88   :  { %856 = vmatprep.subr.mxu0 %v951_v0  ;;  %891 = vmatprep.subr.mxu1 %v951_v0 }
  0x8b   :  { %857 = vmatpush3.xpose.msk.msra.mxu0 %vm82_vm1, %v327_v63  ;;  %892 = vmatpush3.xpose.msk.msra.mxu1 %vm82_vm1, %v466_v1 }
  0x8c   :  { %858 = vmatprep.subr.mxu0 %v951_v0  ;;  %893 = vmatprep.subr.mxu1 %v951_v0  ;;  %v464_v0 = vld [vmem:[%s1316_s7] sm:$0x1]  ;;  %s613_s7 = sshll.u32 %s953_s6, 4  ;;  %s614_s7 = int_to_ptr.vmem [resolvable:$true] %s613_s7 }
  0x8d   :  { %s924_s23 = scalar_lea.vmem %s614_s7, 16  ;;  %s928_s24 = scalar_lea.vmem %s614_s7, 32 }
  0x8e   :  { %p925_p5 = scmp.ne.s32.totalorder %s614_s7, %s924_s23  ;;  %p929_p6 = scmp.lt.s32.totalorder %s614_s7, %s614_s7 }
  0x8f   :  { %859 = vmatpush3.xpose.msk.msra.mxu0 %vm82_vm1, %v326_v2  ;;  %894 = vmatpush3.xpose.msk.msra.mxu1 %vm82_vm1, %v465_v3  ;;  %p930_p7 = scmp.lt.s32.totalorder %s928_s24, %s924_s23 }
  0x91   :  { %p931_p8 = por %p930_p7, %p929_p6 }
  0x92   :  { %861 = vmatmul.mubr.msk.f32.vlgmr.msra.gmra.mxu0 %vm82_vm1, %v325_v4  ;;  %896 = vmatmul.mubr.msk.f32.vlgmr.msra.gmra.mxu1 %vm82_vm1, %v464_v0 }
  0x93   :  { %p932_p9 = pnand %p931_p8, %p925_p5 }
 0x112   :  { %v200_v5 = vpop.f32.mrf.mxu0  ;;  %v321_v6 = vpop.f32.mrf.mxu1 }
 0x113   :  { %v322_v9 = vadd.f32 %v321_v6, %v200_v5 }
 0x114   :  { %v792_v7 = vpop.f32.mrf.mxu0  ;;  %v827_v8 = vpop.f32.mrf.mxu1 }
 0x152   :  { %v459_v10 = vpop.f32.mrf.mxu0  ;;  %v598_v11 = vpop.f32.mrf.mxu1 }
 0x153   :  { %v463_v12 = vadd.f32 %v459_v10, %v322_v9 }
 0x154   :  { %v862_v14 = vpop.f32.mrf.mxu0  ;;  %v897_v15 = vpop.f32.mrf.mxu1 }
 0x155   :  { %v602_v16 = vadd.f32 %v598_v11, %v463_v12 }
 0x157   :  { %v605_v17 = vadd.f32 %v604_v13, %v602_v16 }
 0x159   :  { %606 = vst [vmem:[#allocation6] sm:$0x1] %v605_v17 }
 0x15a   :  { %935 = shalt.err (!%p932_p9)
}
 0x15b   :  { %616 = dma.vmem_to_hbm [thread:$0]  %s614_s7, 16, %s1318_s9, [#allocation5]  }
 0x15c   :  { %946 = dma.done.wait [#allocation5], 16  }
 0x15d   :  { %947 = vsyncadd [#allocation5], 4294967280 }
 0x15e   :  { %620 = vsyncpa [#allocation4], 1 }
 0x15f   :  { %621 = vsyncpa [#allocation5], 1 }

</bundles_post_ra>
